<compile_context>
chip_gen: v5e
topology: v5e:2x2
jax: 0.10.0
libtpu: 0.0.40
codegen_flags: <defaults>
</compile_context>

<pallas_src>
import functools

import jax
import jax.numpy as jnp
from jax.experimental import pallas as pl
from jax.experimental.pallas import tpu as pltpu

LANE = 128          # lane width (last-dim granularity)
BF16_SUBLANE = 16   # bf16 sublane packing granularity


def _round_up(x, m):
    return (x + m - 1) // m * m


def _disc_kernel(x_ref, w1_ref, b1_ref, w2_ref, b2_ref, w3_ref, b3_ref, o_ref):
    # Three MXU matmuls (bf16 in, f32 accumulate); bias add + ReLU in f32 (VPU).
    x = x_ref[...].astype(w1_ref.dtype)          # in-kernel f32 -> bf16 cast
    h1 = jnp.dot(x, w1_ref[...], preferred_element_type=jnp.float32) + b1_ref[...]
    h1 = jnp.maximum(h1, 0.0)
    h2 = jnp.dot(h1.astype(w2_ref.dtype), w2_ref[...],
                 preferred_element_type=jnp.float32) + b2_ref[...]
    h2 = jnp.maximum(h2, 0.0)
    o = jnp.dot(h2.astype(w3_ref.dtype), w3_ref[...],
                preferred_element_type=jnp.float32) + b3_ref[...]
    o_ref[...] = o.astype(o_ref.dtype)


@functools.partial(jax.jit, static_argnames=("tile_n",))
def discriminator_forward(x, params, *, tile_n=1024):
    """x: (N, in_channels) f32.

    params: dict with w1,b1,w2,b2,w3,b3; w_i is (fan_in, fan_out) (transposed vs
    torch.nn.Linear.weight), b_i is (1, fan_out). Computes
    lin3(relu(lin2(relu(lin1(x))))) exactly like the PyTorch Discriminator.
    """
    w1, b1, w2, b2, w3, b3 = (params[k] for k in ("w1", "b1", "w2", "b2", "w3", "b3"))
    N, Cin = x.shape
    H = w1.shape[1]
    Cout = w3.shape[1]
    H_p = _round_up(H, LANE)

    # --- Adaptive batch tile (multiple of 16 for bf16 sublane packing). ---
    # Small N: a single (ragged) tile -> no padding-only grid steps.
    # Large N: big tiles to amortize per-step overhead / hit HBM roofline.
    n16 = _round_up(max(N, 1), BF16_SUBLANE)
    if n16 <= 2048:
        tile_n = n16
    else:
        tile_n = min(_round_up(max(tile_n, BF16_SUBLANE), BF16_SUBLANE), 2048)
    grid = (pl.cdiv(N, tile_n),)

    # --- Weights: pad only the hidden dim to the lane width; cast to bf16. ---
    # Zero padding of weights + biases keeps padded hidden columns exactly 0
    # through the ReLUs, so results match the unpadded model.
    cdt = jnp.bfloat16
    dh = H_p - H
    w1p = jnp.pad(w1, ((0, 0), (0, dh))).astype(cdt)      # (Cin, H_p), K unpadded
    w2p = jnp.pad(w2, ((0, dh), (0, dh))).astype(cdt)     # (H_p, H_p)
    w3p = jnp.pad(w3, ((0, dh), (0, 0))).astype(cdt)      # (H_p, Cout)
    b1p = jnp.pad(b1, ((0, 0), (0, dh))).astype(jnp.float32)
    b2p = jnp.pad(b2, ((0, 0), (0, dh))).astype(jnp.float32)
    b3p = b3.astype(jnp.float32)

    # Weights/biases stay resident in VMEM across the batch grid.
    resident = lambda arr: pl.BlockSpec(arr.shape, lambda i: (0, 0))
    # NOTE: for very large H (resident weights >~40 MiB) this would need
    # pl.Buffered(1) weight specs or K-tiling to fit v7x's 64 MiB VMEM.

    # --- VMEM budget: size to the actual footprint, cap for v7x safety. ---
    resident_bytes = sum(int(a.size) * a.dtype.itemsize
                         for a in (w1p, w2p, w3p, b1p, b2p, b3p))
    stream_bytes = 2 * tile_n * (Cin * 4 + Cout * 4)       # double-buffered x/out
    work_bytes = 4 * tile_n * H_p * 4                      # h1/h2/temps (f32)
    vmem_limit = int(min(max(32 << 20, 2 * (resident_bytes + stream_bytes + work_bytes)),
                         48 << 20))

    flops = 2 * N * (Cin * H_p + H_p * H_p + H_p * Cout)
    bytes_accessed = (x.size * 4 + resident_bytes + N * Cout * 4)

    return pl.pallas_call(
        _disc_kernel,
        out_shape=jax.ShapeDtypeStruct((N, Cout), jnp.float32),
        grid=grid,
        in_specs=[
            pl.BlockSpec((tile_n, Cin), lambda i: (i, 0)),  # streamed raw-f32 x tile
            resident(w1p), resident(b1p),
            resident(w2p), resident(b2p),
            resident(w3p), resident(b3p),
        ],
        out_specs=pl.BlockSpec((tile_n, Cout), lambda i: (i, 0)),
        compiler_params=pltpu.CompilerParams(
            dimension_semantics=("parallel",),   # batch tiles are independent
            vmem_limit_bytes=vmem_limit,
        ),
        cost_estimate=pl.CostEstimate(
            flops=flops, transcendentals=0, bytes_accessed=bytes_accessed),
    )(x, w1p, b1p, w2p, b2p, w3p, b3p)


def init_params(key, in_channels, hidden_channels, out_channels, dtype=jnp.float32):
    # Matches torch.nn.Linear default init: U(-1/sqrt(fan_in), 1/sqrt(fan_in)).
    ks = jax.random.split(key, 6)

    def lin(kw, kb, fan_in, fan_out):
        bound = 1.0 / jnp.sqrt(fan_in)
        w = jax.random.uniform(kw, (fan_in, fan_out), dtype, -bound, bound)
        b = jax.random.uniform(kb, (1, fan_out), dtype, -bound, bound)
        return w, b

    w1, b1 = lin(ks[0], ks[1], in_channels, hidden_channels)
    w2, b2 = lin(ks[2], ks[3], hidden_channels, hidden_channels)
    w3, b3 = lin(ks[4], ks[5], hidden_channels, out_channels)
    return dict(w1=w1, b1=b1, w2=w2, b2=b2, w3=w3, b3=b3)


def _reference_forward_bf16(x, params):
    # Pure-JAX reference with the same bf16 matmul inputs / f32 accumulation.
    c = lambda a: a.astype(jnp.bfloat16).astype(jnp.float32)
    h1 = jnp.maximum(c(x) @ c(params["w1"]) + params["b1"], 0.0)
    h2 = jnp.maximum(c(h1) @ c(params["w2"]) + params["b2"], 0.0)
    return c(h2) @ c(params["w3"]) + params["b3"]


if __name__ == "__main__":
    key = jax.random.PRNGKey(0)
    k_x, k_p = jax.random.split(key)

    # Small logical shapes (graph-node features -> MLP). N=300 exercises the
    # single ragged-tile path (no batch padding needed in the wrapper).
    N, in_channels, hidden_channels, out_channels = 300, 16, 32, 8
    x = jax.random.normal(k_x, (N, in_channels), jnp.float32)
    params = init_params(k_p, in_channels, hidden_channels, out_channels)

    out = jax.block_until_ready(discriminator_forward(x, params))
    ref = _reference_forward_bf16(x, params)
    assert out.shape == (N, out_channels), out.shape
    assert jnp.allclose(out, ref, atol=1e-2, rtol=1e-2), float(jnp.max(jnp.abs(out - ref)))

    # Multi-step grid + ragged last tile (grid > 1) with the streaming path.
    N2 = 2500
    x2 = jax.random.normal(k_x, (N2, in_channels), jnp.float32)
    out2 = jax.block_until_ready(discriminator_forward(x2, params, tile_n=1024))
    ref2 = _reference_forward_bf16(x2, params)
    assert out2.shape == (N2, out_channels), out2.shape
    assert jnp.allclose(out2, ref2, atol=1e-2, rtol=1e-2), float(jnp.max(jnp.abs(out2 - ref2)))

    print("KERNEL_OK")
</pallas_src>

<mosaic_0001>
module attributes {stable_mosaic.version = 11 : i64} {
  func.func @_disc_kernel(%arg0: i32, %arg1: memref<304x16xf32, #tpu.memory_space<vmem>>, %arg2: memref<16x128xbf16, #tpu.memory_space<vmem>>, %arg3: memref<1x128xf32, #tpu.memory_space<vmem>>, %arg4: memref<128x128xbf16, #tpu.memory_space<vmem>>, %arg5: memref<1x128xf32, #tpu.memory_space<vmem>>, %arg6: memref<128x8xbf16, #tpu.memory_space<vmem>>, %arg7: memref<1x8xf32, #tpu.memory_space<vmem>>, %arg8: memref<304x8xf32, #tpu.memory_space<vmem>>) attributes {dimension_semantics = [#tpu.dimension_semantics<parallel>], iteration_bounds = array<i64: 1>, scalar_prefetch = 0 : i64, scratch_operands = 0 : i64, tpu.core_type = #tpu.core_type<tc>, window_params = [{transform_indices = @transform_0, window_bounds = array<i64: 304, 16>}, {pipeline_mode = #tpu.pipeline_mode<synchronous>, transform_indices = @transform_1, window_bounds = array<i64: 16, 128>}, {pipeline_mode = #tpu.pipeline_mode<synchronous>, transform_indices = @transform_2, window_bounds = array<i64: 1, 128>}, {pipeline_mode = #tpu.pipeline_mode<synchronous>, transform_indices = @transform_3, window_bounds = array<i64: 128, 128>}, {pipeline_mode = #tpu.pipeline_mode<synchronous>, transform_indices = @transform_4, window_bounds = array<i64: 1, 128>}, {pipeline_mode = #tpu.pipeline_mode<synchronous>, transform_indices = @transform_5, window_bounds = array<i64: 128, 8>}, {pipeline_mode = #tpu.pipeline_mode<synchronous>, transform_indices = @transform_6, window_bounds = array<i64: 1, 8>}, {transform_indices = @transform_7, window_bounds = array<i64: 304, 8>}]} {
    %c0 = arith.constant 0 : index
    %c0_0 = arith.constant 0 : index
    %0 = vector.load %arg1[%c0, %c0_0] : memref<304x16xf32, #tpu.memory_space<vmem>>, vector<304x16xf32>
    %1 = arith.truncf %0 : vector<304x16xf32> to vector<304x16xbf16>
    %c0_1 = arith.constant 0 : index
    %c0_2 = arith.constant 0 : index
    %2 = vector.load %arg2[%c0_1, %c0_2] : memref<16x128xbf16, #tpu.memory_space<vmem>>, vector<16x128xbf16>
    %cst = arith.constant dense<0.000000e+00> : vector<304x128xf32>
    %3 = tpu.matmul %1, %2, %cst {dimension_numbers = #tpu.dot_dimension_numbers<[1], [0], [0], [1], [0, 0, 1, 1], [], []>} : vector<304x16xbf16>, vector<16x128xbf16>, vector<304x128xf32> -> vector<304x128xf32>
    %c0_3 = arith.constant 0 : index
    %c0_4 = arith.constant 0 : index
    %4 = vector.load %arg3[%c0_3, %c0_4] : memref<1x128xf32, #tpu.memory_space<vmem>>, vector<1x128xf32>
    %5 = vector.broadcast %4 : vector<1x128xf32> to vector<304x128xf32>
    %6 = arith.addf %3, %5 : vector<304x128xf32>
    %cst_5 = arith.constant 0.000000e+00 : f32
    %7 = vector.broadcast %cst_5 : f32 to vector<304x128xf32>
    %8 = arith.maximumf %6, %7 : vector<304x128xf32>
    %9 = arith.truncf %8 : vector<304x128xf32> to vector<304x128xbf16>
    %c0_6 = arith.constant 0 : index
    %c0_7 = arith.constant 0 : index
    %10 = vector.load %arg4[%c0_6, %c0_7] : memref<128x128xbf16, #tpu.memory_space<vmem>>, vector<128x128xbf16>
    %cst_8 = arith.constant dense<0.000000e+00> : vector<304x128xf32>
    %11 = tpu.matmul %9, %10, %cst_8 {dimension_numbers = #tpu.dot_dimension_numbers<[1], [0], [0], [1], [0, 0, 1, 1], [], []>} : vector<304x128xbf16>, vector<128x128xbf16>, vector<304x128xf32> -> vector<304x128xf32>
    %c0_9 = arith.constant 0 : index
    %c0_10 = arith.constant 0 : index
    %12 = vector.load %arg5[%c0_9, %c0_10] : memref<1x128xf32, #tpu.memory_space<vmem>>, vector<1x128xf32>
    %13 = vector.broadcast %12 : vector<1x128xf32> to vector<304x128xf32>
    %14 = arith.addf %11, %13 : vector<304x128xf32>
    %cst_11 = arith.constant 0.000000e+00 : f32
    %15 = vector.broadcast %cst_11 : f32 to vector<304x128xf32>
    %16 = arith.maximumf %14, %15 : vector<304x128xf32>
    %17 = arith.truncf %16 : vector<304x128xf32> to vector<304x128xbf16>
    %c0_12 = arith.constant 0 : index
    %c0_13 = arith.constant 0 : index
    %18 = vector.load %arg6[%c0_12, %c0_13] : memref<128x8xbf16, #tpu.memory_space<vmem>>, vector<128x8xbf16>
    %cst_14 = arith.constant dense<0.000000e+00> : vector<304x8xf32>
    %19 = tpu.matmul %17, %18, %cst_14 {dimension_numbers = #tpu.dot_dimension_numbers<[1], [0], [0], [1], [0, 0, 1, 1], [], []>} : vector<304x128xbf16>, vector<128x8xbf16>, vector<304x8xf32> -> vector<304x8xf32>
    %c0_15 = arith.constant 0 : index
    %c0_16 = arith.constant 0 : index
    %20 = vector.load %arg7[%c0_15, %c0_16] : memref<1x8xf32, #tpu.memory_space<vmem>>, vector<1x8xf32>
    %21 = vector.broadcast %20 : vector<1x8xf32> to vector<304x8xf32>
    %22 = arith.addf %19, %21 : vector<304x8xf32>
    %c0_17 = arith.constant 0 : index
    %c0_18 = arith.constant 0 : index
    %23 = vector.load %arg8[%c0_17, %c0_18] : memref<304x8xf32, #tpu.memory_space<vmem>>, vector<304x8xf32>
    tpu.vector_store %arg8[%c0_17, %c0_18], %22 {strides = array<i32>} : memref<304x8xf32, #tpu.memory_space<vmem>>, vector<304x8xf32>,
    return
  }
  func.func @transform_0(%arg0: i32) -> (i32, i32) {
    %c0_i32 = arith.constant 0 : i32
    %c0_i32_0 = arith.constant 0 : i32
    return %arg0, %c0_i32 : i32, i32
  }
  func.func @transform_1(%arg0: i32) -> (i32, i32) {
    %c0_i32 = arith.constant 0 : i32
    %c0_i32_0 = arith.constant 0 : i32
    %c0_i32_1 = arith.constant 0 : i32
    return %c0_i32, %c0_i32_0 : i32, i32
  }
  func.func @transform_2(%arg0: i32) -> (i32, i32) {
    %c0_i32 = arith.constant 0 : i32
    %c0_i32_0 = arith.constant 0 : i32
    %c0_i32_1 = arith.constant 0 : i32
    return %c0_i32, %c0_i32_0 : i32, i32
  }
  func.func @transform_3(%arg0: i32) -> (i32, i32) {
    %c0_i32 = arith.constant 0 : i32
    %c0_i32_0 = arith.constant 0 : i32
    %c0_i32_1 = arith.constant 0 : i32
    return %c0_i32, %c0_i32_0 : i32, i32
  }
  func.func @transform_4(%arg0: i32) -> (i32, i32) {
    %c0_i32 = arith.constant 0 : i32
    %c0_i32_0 = arith.constant 0 : i32
    %c0_i32_1 = arith.constant 0 : i32
    return %c0_i32, %c0_i32_0 : i32, i32
  }
  func.func @transform_5(%arg0: i32) -> (i32, i32) {
    %c0_i32 = arith.constant 0 : i32
    %c0_i32_0 = arith.constant 0 : i32
    %c0_i32_1 = arith.constant 0 : i32
    return %c0_i32, %c0_i32_0 : i32, i32
  }
  func.func @transform_6(%arg0: i32) -> (i32, i32) {
    %c0_i32 = arith.constant 0 : i32
    %c0_i32_0 = arith.constant 0 : i32
    %c0_i32_1 = arith.constant 0 : i32
    return %c0_i32, %c0_i32_0 : i32, i32
  }
  func.func @transform_7(%arg0: i32) -> (i32, i32) {
    %c0_i32 = arith.constant 0 : i32
    %c0_i32_0 = arith.constant 0 : i32
    return %arg0, %c0_i32 : i32, i32
  }
}

</mosaic_0001>

<bundles_post_ra>
// kernel: discriminator_forward.1
= control target key start
LH: loop header
LB: loop body
LE: loop exit
PB: predicated region body
PF: predicated region fallthrough
CT: control target
= control target key end

     0   :  { %vm96_vm0 = vcmask 130048   ;;  %vm716_vm1 = vcmask 64512   ;;  %s1388_s1 = inlined_call_operand.vmem [shape: bf16[16,128], index: 1, kind: input, shape index: {}]   ;;  %s1389_s0 = inlined_call_operand.vmem [shape: f32[300,16], index: 0, kind: input, shape index: {}]   ;;  %s1390_s2 = inlined_call_operand.vmem [shape: f32[1,128], index: 2, kind: input, shape index: {}]   ;;  %s1391_s3 = inlined_call_operand.vmem [shape: bf16[128,128], index: 3, kind: input, shape index: {}]   ;;  %s1392_s4 = inlined_call_operand.vmem [shape: f32[1,128], index: 4, kind: input, shape index: {}]   ;;  %s1393_s5 = inlined_call_operand.vmem [shape: bf16[128,8], index: 5, kind: input, shape index: {}]   ;;  %s1394_s6 = inlined_call_operand.vmem [shape: f32[1,8], index: 6, kind: input, shape index: {}]   ;;  %s1395_s7 = inlined_call_operand.vmem [shape: f32[300,8], index: 7, kind: output, shape index: {}]  }
   0x1   :  { %v846_v0 = vld [vmem:[%s1388_s1] sm:$0xff]  ;;  %v28_v2 = vld [vmem:[%s1389_s0 + $0x8] sm:$0xff]  ;;  %v29_v4 = vld [vmem:[%s1389_s0 + $0x10] sm:$0xff] }
   0x2   :  { %v27_v1 = vld [vmem:[%s1389_s0] sm:$0xff]  ;;  %161 = vmatpush.bf16.msra.mxu0 %v846_v0  ;;  %863 = vmatpush.bf16.msra.mxu3 %v846_v0  ;;  %v30_v5 = vld [vmem:[%s1389_s0 + $0x18] sm:$0xff]  ;;  %v32_v8 = vld [vmem:[%s1389_s0 + $0x28] sm:$0xff] }
   0x3   :  { %v65_v3 = vpack.c.bf16 %v28_v2, %v27_v1  ;;  %v66_v6 = vpack.c.bf16 %v30_v5, %v29_v4  ;;  %v31_v7 = vld [vmem:[%s1389_s0 + $0x20] sm:$0xff]  ;;  %v33_v10 = vld [vmem:[%s1389_s0 + $0x30] sm:$0xff]  ;;  %v34_v11 = vld [vmem:[%s1389_s0 + $0x38] sm:$0xff] }
   0x4   :  { %v67_v9 = vpack.c.bf16 %v32_v8, %v31_v7  ;;  %v68_v12 = vpack.c.bf16 %v34_v11, %v33_v10  ;;  %v35_v13 = vld [vmem:[%s1389_s0 + $0x40] sm:$0xff]  ;;  %v36_v14 = vld [vmem:[%s1389_s0 + $0x48] sm:$0xff]  ;;  %v854_v16 = vld [vmem:[%s1391_s3 + $0x38] sm:$0xff] }
   0x5   :  { %763 = vmatmul.msk.bf16.vlgmr.msra.gmra.mxu0 %vm96_vm0, %v65_v3  ;;  %v69_v15 = vpack.c.bf16 %v36_v14, %v35_v13  ;;  %383 = vmatpush.bf16.msra.mxu1 %v854_v16  ;;  %v37_v17 = vld [vmem:[%s1389_s0 + $0x50] sm:$0xff]  ;;  %v38_v18 = vld [vmem:[%s1389_s0 + $0x58] sm:$0xff]  ;;  %v852_v21 = vld [vmem:[%s1391_s3 + $0x28] sm:$0xff] }
   0x6   :  { %864 = vmatpush.bf16.msrb.mxu3 %v854_v16  ;;  %v70_v19 = vpack.c.bf16 %v38_v18, %v37_v17  ;;  %v853_v20 = vld [vmem:[%s1391_s3 + $0x30] sm:$0xff]  ;;  %v851_v22 = vld [vmem:[%s1391_s3 + $0x20] sm:$0xff]  ;;  %v40_v24 = vld [vmem:[%s1389_s0 + $0x68] sm:$0xff] }
   0x7   :  { %v39_v23 = vld [vmem:[%s1389_s0 + $0x60] sm:$0xff]  ;;  %v850_v25 = vld [vmem:[%s1391_s3 + $0x18] sm:$0xff]  ;;  %v849_v27 = vld [vmem:[%s1391_s3 + $0x10] sm:$0xff] }
   0x8   :  { %v71_v26 = vpack.c.bf16 %v40_v24, %v39_v23  ;;  %v848_v28 = vld [vmem:[%s1391_s3 + $0x8] sm:$0xff]  ;;  %v847_v29 = vld [vmem:[%s1391_s3] sm:$0xff]  ;;  %v41_v30 = vld [vmem:[%s1389_s0 + $0x70] sm:$0xff] }
   0x9   :  { %384 = vmatpush.bf16.msra.mxu1 %v853_v20  ;;  %v42_v31 = vld [vmem:[%s1389_s0 + $0x78] sm:$0xff]  ;;  %v43_v33 = vld [vmem:[%s1389_s0 + $0x80] sm:$0xff]  ;;  %v44_v34 = vld [vmem:[%s1389_s0 + $0x88] sm:$0xff] }
   0xa   :  { %865 = vmatpush.bf16.msrb.mxu3 %v853_v20  ;;  %v72_v32 = vpack.c.bf16 %v42_v31, %v41_v30  ;;  %v73_v35 = vpack.c.bf16 %v44_v34, %v43_v33  ;;  %v1015_v37 = vld [vmem:[%s1390_s2] ss:$0 sm:$0xff]  ;;  %v45_v43 = vld [vmem:[%s1389_s0 + $0x90] sm:$0xff]  ;;  %v46_v44 = vld [vmem:[%s1389_s0 + $0x98] sm:$0xff] }
   0xb   :  { %v74_v46 = vpack.c.bf16 %v46_v44, %v45_v43  ;;  %v47_v53 = vld [vmem:[%s1389_s0 + $0xa0] sm:$0xff]  ;;  %v48_v54 = vld [vmem:[%s1389_s0 + $0xa8] sm:$0xff]  ;;  %v49_v63 = vld [vmem:[%s1389_s0 + $0xb0] sm:$0xff] }
   0xc   :  { %v75_v56 = vpack.c.bf16 %v48_v54, %v47_v53  ;;  %v50_v0 = vld [vmem:[%s1389_s0 + $0xb8] sm:$0xff]  ;;  %v52_v10 = vld [vmem:[%s1389_s0 + $0xc8] sm:$0xff]  ;;  %v59_v24 = vld [vmem:[%s1389_s0 + $0x100] sm:$0xff] }
   0xd   :  { %385 = vmatpush.bf16.msra.mxu1 %v852_v21  ;;  %v76_v2 = vpack.c.bf16 %v50_v0, %v49_v63  ;;  %v54_v20 = vld [vmem:[%s1389_s0 + $0xd8] sm:$0xff]  ;;  %v55_v33 = vld [vmem:[%s1389_s0 + $0xe0] sm:$0xff]  ;;  %v56_v34 = vld [vmem:[%s1389_s0 + $0xe8] sm:$0xff] }
   0xe   :  { %866 = vmatpush.bf16.msrb.mxu3 %v852_v21  ;;  %v862_v30 = vld [vmem:[%s1393_s5 + $0x38] sm:$0xff]  ;;  %v859_v44 = vld [vmem:[%s1393_s5 + $0x20] sm:$0xff]  ;;  %v857_v54 = vld [vmem:[%s1393_s5 + $0x10] sm:$0xff] }
   0xf   :  { %612 = vmatpush.bf16.msra.mxu2 %v862_v30 }
  0x11   :  { %386 = vmatpush.bf16.msra.mxu1 %v851_v22 }
  0x12   :  { %867 = vmatpush.bf16.msrb.mxu3 %v851_v22 }
  0x15   :  { %764 = vmatmul.msk.bf16.gmra.mxu0 %vm96_vm0, %v66_v6  ;;  %387 = vmatpush.bf16.msra.mxu1 %v850_v25 }
  0x16   :  { %868 = vmatpush.bf16.msrb.mxu3 %v850_v25  ;;  %v60_v25 = vld [vmem:[%s1389_s0 + $0x108] sm:$0xff] }
  0x19   :  { %388 = vmatpush.bf16.msra.mxu1 %v849_v27 }
  0x1a   :  { %869 = vmatpush.bf16.msrb.mxu3 %v849_v27 }
  0x1d   :  { %389 = vmatpush.bf16.msra.mxu1 %v848_v28 }
  0x1e   :  { %870 = vmatpush.bf16.msrb.mxu3 %v848_v28 }
  0x21   :  { %390 = vmatpush.bf16.msra.mxu1 %v847_v29 }
  0x22   :  { %871 = vmatpush.bf16.msrb.mxu3 %v847_v29 }
  0x25   :  { %765 = vmatmul.msk.bf16.gmra.mxu0 %vm96_vm0, %v67_v9  ;;  %v51_v9 = vld [vmem:[%s1389_s0 + $0xc0] sm:$0xff] }
  0x35   :  { %766 = vmatmul.msk.bf16.gmra.mxu0 %vm96_vm0, %v68_v12  ;;  %v77_v12 = vpack.c.bf16 %v52_v10, %v51_v9 }
  0x45   :  { %767 = vmatmul.msk.bf16.gmra.mxu0 %vm96_vm0, %v69_v15 }
  0x55   :  { %768 = vmatmul.msk.bf16.gmra.mxu0 %vm96_vm0, %v70_v19  ;;  %v53_v19 = vld [vmem:[%s1389_s0 + $0xd0] sm:$0xff] }
  0x56   :  { %v78_v22 = vpack.c.bf16 %v54_v20, %v53_v19 }
  0x65   :  { %769 = vmatmul.msk.bf16.gmra.mxu0 %vm96_vm0, %v71_v26  ;;  %v81_v26 = vpack.c.bf16 %v60_v25, %v59_v24 }
  0x67   :  { %779 = vmatmul.msk.bf16.vlgmr.msra.gmra.mxu3 %vm96_vm0, %v81_v26 }
  0x68   :  { %872 = vmatpush.bf16.msra.mxu3 %v862_v30 }
  0x75   :  { %770 = vmatmul.msk.bf16.gmra.mxu0 %vm96_vm0, %v72_v32 }
  0x82   :  { %v163_v36 = vpop.f32.mrf.mxu0 }
  0x83   :  { %v164_v38 = vadd.f32 %v1015_v37, %v163_v36  ;;  %v861_v36 = vld [vmem:[%s1393_s5 + $0x30] sm:$0xff] }
  0x84   :  { %613 = vmatpush.bf16.msra.mxu2 %v861_v36  ;;  %873 = vmatpush.bf16.msra.mxu3 %v861_v36 }
  0x85   :  { %771 = vmatmul.msk.bf16.gmra.mxu0 %vm96_vm0, %v73_v35  ;;  %v258_v41 = vmax.f32 %v164_v38, 0.0  ;;  %v79_v38 = vpack.c.bf16 %v56_v34, %v55_v33 }
  0x8a   :  { %v165_v39 = vpop.f32.mrf.mxu0 }
  0x8b   :  { %v166_v40 = vadd.f32 %v1015_v37, %v165_v39 }
  0x8d   :  { %v259_v42 = vmax.f32 %v166_v40, 0.0  ;;  %v860_v40 = vld [vmem:[%s1393_s5 + $0x28] sm:$0xff] }
  0x8e   :  { %614 = vmatpush.bf16.msra.mxu2 %v860_v40  ;;  %874 = vmatpush.bf16.msra.mxu3 %v860_v40 }
  0x8f   :  { %v296_v45 = vpack.c.bf16 %v259_v42, %v258_v41  ;;  %v61_v41 = vld [vmem:[%s1389_s0 + $0x110] sm:$0xff]  ;;  %v62_v42 = vld [vmem:[%s1389_s0 + $0x118] sm:$0xff] }
  0x90   :  { %v82_v43 = vpack.c.bf16 %v62_v42, %v61_v41 }
  0x91   :  { %391 = vmatmul.bf16.vlgmr.msra.gmra.mxu1 %v296_v45 }
  0x92   :  { %v168_v47 = vpop.f32.mrf.mxu0  ;;  %780 = vmatmul.msk.bf16.gmra.mxu3 %vm96_vm0, %v82_v43  ;;  %615 = vmatpush.bf16.msra.mxu2 %v859_v44 }
  0x93   :  { %v169_v48 = vadd.f32 %v1015_v37, %v168_v47  ;;  %875 = vmatpush.bf16.msra.mxu3 %v859_v44 }
  0x95   :  { %772 = vmatmul.msk.bf16.gmra.mxu0 %vm96_vm0, %v74_v46  ;;  %v260_v51 = vmax.f32 %v169_v48, 0.0  ;;  %v858_v48 = vld [vmem:[%s1393_s5 + $0x18] sm:$0xff] }
  0x96   :  { %616 = vmatpush.bf16.msra.mxu2 %v858_v48 }
  0x97   :  { %876 = vmatpush.bf16.msra.mxu3 %v858_v48 }
  0x9a   :  { %v170_v49 = vpop.f32.mrf.mxu0  ;;  %617 = vmatpush.bf16.msra.mxu2 %v857_v54 }
  0x9b   :  { %v171_v50 = vadd.f32 %v1015_v37, %v170_v49  ;;  %877 = vmatpush.bf16.msra.mxu3 %v857_v54 }
  0x9d   :  { %v261_v52 = vmax.f32 %v171_v50, 0.0 }
  0x9f   :  { %v297_v55 = vpack.c.bf16 %v261_v52, %v260_v51  ;;  %v57_v51 = vld [vmem:[%s1389_s0 + $0xf0] sm:$0xff]  ;;  %v58_v52 = vld [vmem:[%s1389_s0 + $0xf8] sm:$0xff] }
  0xa1   :  { %396 = vmatmul.bf16.gmra.mxu1 %v297_v55  ;;  %v80_v55 = vpack.c.bf16 %v58_v52, %v57_v51 }
  0xa2   :  { %v173_v57 = vpop.f32.mrf.mxu0 }
  0xa3   :  { %v174_v58 = vadd.f32 %v1015_v37, %v173_v57  ;;  %v856_v57 = vld [vmem:[%s1393_s5 + $0x8] sm:$0xff] }
  0xa4   :  { %618 = vmatpush.bf16.msra.mxu2 %v856_v57  ;;  %878 = vmatpush.bf16.msra.mxu3 %v856_v57 }
  0xa5   :  { %773 = vmatmul.msk.bf16.gmra.mxu0 %vm96_vm0, %v75_v56  ;;  %v262_v61 = vmax.f32 %v174_v58, 0.0  ;;  %v63_v58 = vld [vmem:[%s1389_s0 + $0x120] sm:$0xff] }
  0xaa   :  { %v175_v59 = vpop.f32.mrf.mxu0 }
  0xab   :  { %v176_v60 = vadd.f32 %v1015_v37, %v175_v59  ;;  %v64_v59 = vld [vmem:[%s1389_s0 + $0x128] sm:$0xff] }
  0xad   :  { %v263_v62 = vmax.f32 %v176_v60, 0.0  ;;  %v83_v60 = vpack.c.bf16 %v64_v59, %v63_v58 }
  0xaf   :  { %v298_v1 = vpack.c.bf16 %v263_v62, %v262_v61  ;;  %781 = vmatmul.msk.bf16.gmra.mxu3 %vm96_vm0, %v83_v60  ;;  %v855_v61 = vld [vmem:[%s1393_s5] sm:$0xff] }
  0xb0   :  { %619 = vmatpush.bf16.msra.mxu2 %v855_v61  ;;  %879 = vmatpush.bf16.msra.mxu3 %v855_v61 }
  0xb1   :  { %401 = vmatmul.bf16.gmra.mxu1 %v298_v1 }
  0xb2   :  { %v178_v3 = vpop.f32.mrf.mxu0 }
  0xb3   :  { %v179_v4 = vadd.f32 %v1015_v37, %v178_v3 }
  0xb5   :  { %774 = vmatmul.msk.bf16.gmra.mxu0 %vm96_vm0, %v76_v2  ;;  %v264_v7 = vmax.f32 %v179_v4, 0.0 }
  0xba   :  { %v180_v5 = vpop.f32.mrf.mxu0 }
  0xbb   :  { %v181_v6 = vadd.f32 %v1015_v37, %v180_v5 }
  0xbd   :  { %v265_v8 = vmax.f32 %v181_v6, 0.0 }
  0xbf   :  { %v299_v11 = vpack.c.bf16 %v265_v8, %v264_v7 }
  0xc1   :  { %406 = vmatmul.bf16.gmra.mxu1 %v299_v11 }
  0xc2   :  { %v183_v13 = vpop.f32.mrf.mxu0 }
  0xc3   :  { %v184_v14 = vadd.f32 %v1015_v37, %v183_v13 }
  0xc5   :  { %775 = vmatmul.msk.bf16.gmra.mxu0 %vm96_vm0, %v77_v12  ;;  %v266_v17 = vmax.f32 %v184_v14, 0.0  ;;  %v1133_v12 = vld [vmem:[%s1392_s4] ss:$0 sm:$0xff] }
  0xca   :  { %v185_v15 = vpop.f32.mrf.mxu0 }
  0xcb   :  { %v186_v16 = vadd.f32 %v1015_v37, %v185_v15 }
  0xcd   :  { %v267_v18 = vmax.f32 %v186_v16, 0.0 }
  0xcf   :  { %v300_v21 = vpack.c.bf16 %v267_v18, %v266_v17 }
  0xd1   :  { %411 = vmatmul.bf16.gmra.mxu1 %v300_v21 }
  0xd2   :  { %v188_v23 = vpop.f32.mrf.mxu0 }
  0xd3   :  { %v189_v27 = vadd.f32 %v1015_v37, %v188_v23 }
  0xd5   :  { %776 = vmatmul.msk.bf16.gmra.mxu0 %vm96_vm0, %v78_v22  ;;  %v268_v31 = vmax.f32 %v189_v27, 0.0 }
  0xda   :  { %v190_v28 = vpop.f32.mrf.mxu0 }
  0xdb   :  { %v191_v29 = vadd.f32 %v1015_v37, %v190_v28 }
  0xdd   :  { %v269_v32 = vmax.f32 %v191_v29, 0.0 }
  0xdf   :  { %v301_v35 = vpack.c.bf16 %v269_v32, %v268_v31 }
  0xe1   :  { %416 = vmatmul.bf16.gmra.mxu1 %v301_v35 }
  0xe2   :  { %v193_v39 = vpop.f32.mrf.mxu0 }
  0xe3   :  { %v194_v45 = vadd.f32 %v1015_v37, %v193_v39 }
  0xe5   :  { %777 = vmatmul.msk.bf16.gmra.mxu0 %vm96_vm0, %v79_v38  ;;  %v270_v49 = vmax.f32 %v194_v45, 0.0 }
  0xea   :  { %v195_v46 = vpop.f32.mrf.mxu0 }
  0xeb   :  { %v196_v47 = vadd.f32 %v1015_v37, %v195_v46 }
  0xed   :  { %v271_v50 = vmax.f32 %v196_v47, 0.0 }
  0xef   :  { %v302_v53 = vpack.c.bf16 %v271_v50, %v270_v49 }
  0xf1   :  { %421 = vmatmul.bf16.gmra.mxu1 %v302_v53 }
  0xf2   :  { %v198_v56 = vpop.f32.mrf.mxu0 }
  0xf3   :  { %v199_v62 = vadd.f32 %v1015_v37, %v198_v56 }
  0xf5   :  { %778 = vmatmul.msk.bf16.gmra.mxu0 %vm96_vm0, %v80_v55  ;;  %v272_v1 = vmax.f32 %v199_v62, 0.0 }
  0xfa   :  { %v200_v63 = vpop.f32.mrf.mxu0 }
  0xfb   :  { %v201_v0 = vadd.f32 %v1015_v37, %v200_v63 }
  0xfd   :  { %v273_v2 = vmax.f32 %v201_v0, 0.0 }
  0xff   :  { %v303_v3 = vpack.c.bf16 %v273_v2, %v272_v1 }
 0x101   :  { %426 = vmatmul.bf16.gmra.mxu1 %v303_v3 }
 0x102   :  { %v203_v4 = vpop.f32.mrf.mxu0 }
 0x103   :  { %v204_v5 = vadd.f32 %v1015_v37, %v203_v4 }
 0x105   :  { %v274_v8 = vmax.f32 %v204_v5, 0.0 }
 0x10a   :  { %v205_v6 = vpop.f32.mrf.mxu0 }
 0x10b   :  { %v206_v7 = vadd.f32 %v1015_v37, %v205_v6 }
 0x10d   :  { %v275_v9 = vmax.f32 %v206_v7, 0.0 }
 0x10e   :  { %v392_v10 = vpop.f32.mrf.mxu1 }
 0x10f   :  { %v304_v11 = vpack.c.bf16 %v275_v9, %v274_v8  ;;  %v393_v14 = vadd.f32 %v1133_v12, %v392_v10 }
 0x111   :  { %431 = vmatmul.bf16.gmra.mxu1 %v304_v11  ;;  %v487_v17 = vmax.f32 %v393_v14, 0.0 }
 0x112   :  { %v208_v13 = vpop.f32.mrf.mxu0 }
 0x113   :  { %v209_v18 = vadd.f32 %v1015_v37, %v208_v13 }
 0x115   :  { %v276_v23 = vmax.f32 %v209_v18, 0.0 }
 0x116   :  { %v394_v15 = vpop.f32.mrf.mxu1 }
 0x117   :  { %v395_v16 = vadd.f32 %v1133_v12, %v394_v15 }
 0x119   :  { %v488_v19 = vmax.f32 %v395_v16, 0.0 }
 0x11a   :  { %v210_v20 = vpop.f32.mrf.mxu0 }
 0x11b   :  { %v211_v21 = vadd.f32 %v1015_v37, %v210_v20  ;;  %v525_v22 = vpack.c.bf16 %v488_v19, %v487_v17 }
 0x11d   :  { %v277_v24 = vmax.f32 %v211_v21, 0.0  ;;  %620 = vmatmul.bf16.vlgmr.msra.gmra.mxu2 %v525_v22 }
 0x11e   :  { %v397_v25 = vpop.f32.mrf.mxu1 }
 0x11f   :  { %v305_v26 = vpack.c.bf16 %v277_v24, %v276_v23  ;;  %v398_v28 = vadd.f32 %v1133_v12, %v397_v25 }
 0x121   :  { %436 = vmatmul.bf16.gmra.mxu1 %v305_v26  ;;  %v489_v31 = vmax.f32 %v398_v28, 0.0 }
 0x122   :  { %v213_v27 = vpop.f32.mrf.mxu0 }
 0x123   :  { %v214_v32 = vadd.f32 %v1015_v37, %v213_v27 }
 0x125   :  { %v278_v38 = vmax.f32 %v214_v32, 0.0 }
 0x126   :  { %v399_v29 = vpop.f32.mrf.mxu1 }
 0x127   :  { %v400_v30 = vadd.f32 %v1133_v12, %v399_v29 }
 0x129   :  { %v490_v33 = vmax.f32 %v400_v30, 0.0 }
 0x12a   :  { %v215_v34 = vpop.f32.mrf.mxu0 }
 0x12b   :  { %v216_v35 = vadd.f32 %v1015_v37, %v215_v34  ;;  %v526_v36 = vpack.c.bf16 %v490_v33, %v489_v31 }
 0x12d   :  { %v279_v39 = vmax.f32 %v216_v35, 0.0  ;;  %625 = vmatmul.bf16.gmra.mxu2 %v526_v36  ;;  %v243_v36 = vpop.f32.mrf.mxu3 }
 0x12e   :  { %v402_v40 = vpop.f32.mrf.mxu1 }
 0x12f   :  { %v306_v41 = vpack.c.bf16 %v279_v39, %v278_v38  ;;  %v403_v43 = vadd.f32 %v1133_v12, %v402_v40 }
 0x131   :  { %441 = vmatmul.bf16.gmra.mxu1 %v306_v41  ;;  %v491_v46 = vmax.f32 %v403_v43, 0.0 }
 0x132   :  { %v218_v42 = vpop.f32.mrf.mxu0 }
 0x133   :  { %v219_v47 = vadd.f32 %v1015_v37, %v218_v42 }
 0x135   :  { %v280_v52 = vmax.f32 %v219_v47, 0.0  ;;  %v245_v47 = vpop.f32.mrf.mxu3 }
 0x136   :  { %v404_v44 = vpop.f32.mrf.mxu1 }
 0x137   :  { %v405_v45 = vadd.f32 %v1133_v12, %v404_v44 }
 0x139   :  { %v492_v48 = vmax.f32 %v405_v45, 0.0 }
 0x13a   :  { %v220_v49 = vpop.f32.mrf.mxu0 }
 0x13b   :  { %v221_v50 = vadd.f32 %v1015_v37, %v220_v49  ;;  %v527_v51 = vpack.c.bf16 %v492_v48, %v491_v46 }
 0x13d   :  { %v281_v53 = vmax.f32 %v221_v50, 0.0  ;;  %630 = vmatmul.bf16.gmra.mxu2 %v527_v51 }
 0x13e   :  { %v407_v54 = vpop.f32.mrf.mxu1 }
 0x13f   :  { %v307_v55 = vpack.c.bf16 %v281_v53, %v280_v52  ;;  %v408_v57 = vadd.f32 %v1133_v12, %v407_v54  ;;  %v248_v54 = vpop.f32.mrf.mxu3 }
 0x141   :  { %446 = vmatmul.bf16.gmra.mxu1 %v307_v55  ;;  %v493_v60 = vmax.f32 %v408_v57, 0.0  ;;  %v244_v55 = vadd.f32 %v1015_v37, %v243_v36 }
 0x142   :  { %v223_v56 = vpop.f32.mrf.mxu0 }
 0x143   :  { %v224_v61 = vadd.f32 %v1015_v37, %v223_v56  ;;  %v246_v56 = vadd.f32 %v1015_v37, %v245_v47 }
 0x145   :  { %v282_v2 = vmax.f32 %v224_v61, 0.0  ;;  %v291_v61 = vmax.f32 %v246_v56, 0.0 }
 0x146   :  { %v409_v58 = vpop.f32.mrf.mxu1 }
 0x147   :  { %v410_v59 = vadd.f32 %v1133_v12, %v409_v58 }
 0x149   :  { %v494_v62 = vmax.f32 %v410_v59, 0.0 }
 0x14a   :  { %v225_v63 = vpop.f32.mrf.mxu0 }
 0x14b   :  { %v226_v0 = vadd.f32 %v1015_v37, %v225_v63  ;;  %v528_v1 = vpack.c.bf16 %v494_v62, %v493_v60  ;;  %v290_v60 = vmax.f32 %v244_v55, 0.0 }
 0x14d   :  { %v283_v3 = vmax.f32 %v226_v0, 0.0  ;;  %635 = vmatmul.bf16.gmra.mxu2 %v528_v1  ;;  %v312_v0 = vpack.c.bf16 %v291_v61, %v290_v60  ;;  %v250_v1 = vpop.f32.mrf.mxu3 }
 0x14e   :  { %v412_v4 = vpop.f32.mrf.mxu1 }
 0x14f   :  { %v308_v5 = vpack.c.bf16 %v283_v3, %v282_v2  ;;  %v413_v7 = vadd.f32 %v1133_v12, %v412_v4  ;;  %v249_v4 = vadd.f32 %v1015_v37, %v248_v54 }
 0x151   :  { %451 = vmatmul.bf16.gmra.mxu1 %v308_v5  ;;  %v495_v10 = vmax.f32 %v413_v7, 0.0  ;;  %v251_v5 = vadd.f32 %v1015_v37, %v250_v1 }
 0x152   :  { %v228_v6 = vpop.f32.mrf.mxu0 }
 0x153   :  { %v229_v11 = vadd.f32 %v1015_v37, %v228_v6 }
 0x155   :  { %v284_v17 = vmax.f32 %v229_v11, 0.0  ;;  %v293_v11 = vmax.f32 %v251_v5, 0.0 }
 0x156   :  { %v414_v8 = vpop.f32.mrf.mxu1 }
 0x157   :  { %v415_v9 = vadd.f32 %v1133_v12, %v414_v8 }
 0x159   :  { %v496_v13 = vmax.f32 %v415_v9, 0.0  ;;  %v253_v9 = vpop.f32.mrf.mxu3 }
 0x15a   :  { %v230_v14 = vpop.f32.mrf.mxu0 }
 0x15b   :  { %v231_v15 = vadd.f32 %v1015_v37, %v230_v14  ;;  %v529_v16 = vpack.c.bf16 %v496_v13, %v495_v10  ;;  %v292_v10 = vmax.f32 %v249_v4, 0.0  ;;  %v1174_v14 = vld [vmem:[%s1394_s6] ss:$0 sm:$0xff] }
 0x15d   :  { %v285_v18 = vmax.f32 %v231_v15, 0.0  ;;  %640 = vmatmul.bf16.gmra.mxu2 %v529_v16  ;;  %v313_v16 = vpack.c.bf16 %v293_v11, %v292_v10 }
 0x15e   :  { %v417_v19 = vpop.f32.mrf.mxu1 }
 0x15f   :  { %v309_v20 = vpack.c.bf16 %v285_v18, %v284_v17  ;;  %v418_v22 = vadd.f32 %v1133_v12, %v417_v19 }
 0x161   :  { %456 = vmatmul.bf16.gmra.mxu1 %v309_v20  ;;  %v497_v25 = vmax.f32 %v418_v22, 0.0  ;;  %v255_v19 = vpop.f32.mrf.mxu3  ;;  %v254_v22 = vadd.f32 %v1015_v37, %v253_v9 }
 0x162   :  { %v233_v21 = vpop.f32.mrf.mxu0 }
 0x163   :  { %v234_v26 = vadd.f32 %v1015_v37, %v233_v21 }
 0x165   :  { %v286_v31 = vmax.f32 %v234_v26, 0.0 }
 0x166   :  { %v419_v23 = vpop.f32.mrf.mxu1 }
 0x167   :  { %v420_v24 = vadd.f32 %v1133_v12, %v419_v23  ;;  %v256_v23 = vadd.f32 %v1015_v37, %v255_v19 }
 0x169   :  { %v498_v27 = vmax.f32 %v420_v24, 0.0 }
 0x16a   :  { %v235_v28 = vpop.f32.mrf.mxu0 }
 0x16b   :  { %v236_v29 = vadd.f32 %v1015_v37, %v235_v28  ;;  %v530_v30 = vpack.c.bf16 %v498_v27, %v497_v25 }
 0x16d   :  { %v287_v32 = vmax.f32 %v236_v29, 0.0  ;;  %645 = vmatmul.bf16.gmra.mxu2 %v530_v30  ;;  %v294_v29 = vmax.f32 %v254_v22, 0.0  ;;  %v295_v30 = vmax.f32 %v256_v23, 0.0 }
 0x16e   :  { %v422_v33 = vpop.f32.mrf.mxu1 }
 0x16f   :  { %v310_v34 = vpack.c.bf16 %v287_v32, %v286_v31  ;;  %v423_v38 = vadd.f32 %v1133_v12, %v422_v33  ;;  %v314_v33 = vpack.c.bf16 %v295_v30, %v294_v29 }
 0x171   :  { %461 = vmatmul.bf16.vlgmr.msrb.gmra.mxu3 %v310_v34  ;;  %v499_v41 = vmax.f32 %v423_v38, 0.0 }
 0x172   :  { %v238_v35 = vpop.f32.mrf.mxu0 }
 0x173   :  { %v239_v42 = vadd.f32 %v1015_v37, %v238_v35 }
 0x175   :  { %v288_v48 = vmax.f32 %v239_v42, 0.0 }
 0x176   :  { %v424_v39 = vpop.f32.mrf.mxu1 }
 0x177   :  { %v425_v40 = vadd.f32 %v1133_v12, %v424_v39 }
 0x179   :  { %v500_v43 = vmax.f32 %v425_v40, 0.0 }
 0x17a   :  { %v240_v44 = vpop.f32.mrf.mxu0 }
 0x17b   :  { %v241_v45 = vadd.f32 %v1015_v37, %v240_v44  ;;  %v531_v46 = vpack.c.bf16 %v500_v43, %v499_v41 }
 0x17d   :  { %v289_v49 = vmax.f32 %v241_v45, 0.0  ;;  %650 = vmatmul.bf16.gmra.mxu2 %v531_v46 }
 0x17e   :  { %v427_v50 = vpop.f32.mrf.mxu1 }
 0x17f   :  { %v311_v51 = vpack.c.bf16 %v289_v49, %v288_v48  ;;  %v428_v52 = vadd.f32 %v1133_v12, %v427_v50 }
 0x181   :  { %466 = vmatmul.bf16.gmra.mxu3 %v311_v51  ;;  %v501_v58 = vmax.f32 %v428_v52, 0.0 }
 0x186   :  { %v429_v53 = vpop.f32.mrf.mxu1 }
 0x187   :  { %v430_v57 = vadd.f32 %v1133_v12, %v429_v53 }
 0x189   :  { %v502_v59 = vmax.f32 %v430_v57, 0.0 }
 0x18b   :  { %v532_v62 = vpack.c.bf16 %v502_v59, %v501_v58 }
 0x18d   :  { %655 = vmatmul.bf16.gmra.mxu2 %v532_v62 }
 0x18e   :  { %v432_v63 = vpop.f32.mrf.mxu1 }
 0x18f   :  { %v433_v2 = vadd.f32 %v1133_v12, %v432_v63 }
 0x191   :  { %471 = vmatmul.bf16.gmra.mxu3 %v312_v0  ;;  %v503_v7 = vmax.f32 %v433_v2, 0.0 }
 0x196   :  { %v434_v3 = vpop.f32.mrf.mxu1 }
 0x197   :  { %v435_v6 = vadd.f32 %v1133_v12, %v434_v3 }
 0x199   :  { %v504_v8 = vmax.f32 %v435_v6, 0.0 }
 0x19b   :  { %v533_v13 = vpack.c.bf16 %v504_v8, %v503_v7 }
 0x19d   :  { %660 = vmatmul.bf16.gmra.mxu2 %v533_v13 }
 0x19e   :  { %v437_v15 = vpop.f32.mrf.mxu1 }
 0x19f   :  { %v438_v20 = vadd.f32 %v1133_v12, %v437_v15 }
 0x1a0   :  { %v621_v17 = vpop.f32.mrf.mxu2 }
 0x1a1   :  { %v622_v18 = vadd.f32 %v1174_v14, %v621_v17  ;;  %476 = vmatmul.bf16.gmra.mxu3 %v313_v16  ;;  %v505_v26 = vmax.f32 %v438_v20, 0.0 }
 0x1a3   :  { %717 = vst.msk [vmem:[%s1395_s7] sm:$0xff] %vm716_vm1, %v622_v18 }
 0x1a6   :  { %v439_v21 = vpop.f32.mrf.mxu1 }
 0x1a7   :  { %v440_v24 = vadd.f32 %v1133_v12, %v439_v21 }
 0x1a8   :  { %v623_v25 = vpop.f32.mrf.mxu2 }
 0x1a9   :  { %v506_v27 = vmax.f32 %v440_v24, 0.0  ;;  %v624_v28 = vadd.f32 %v1174_v14, %v623_v25 }
 0x1ab   :  { %718 = vst.msk [vmem:[%s1395_s7 + $0x8] sm:$0xff] %vm716_vm1, %v624_v28  ;;  %v534_v31 = vpack.c.bf16 %v506_v27, %v505_v26 }
 0x1ad   :  { %665 = vmatmul.bf16.gmra.mxu2 %v534_v31 }
 0x1ae   :  { %v442_v32 = vpop.f32.mrf.mxu1 }
 0x1af   :  { %v443_v35 = vadd.f32 %v1133_v12, %v442_v32 }
 0x1b0   :  { %v626_v34 = vpop.f32.mrf.mxu2 }
 0x1b1   :  { %v627_v37 = vadd.f32 %v1174_v14, %v626_v34  ;;  %481 = vmatmul.bf16.gmra.mxu3 %v314_v33  ;;  %v507_v40 = vmax.f32 %v443_v35, 0.0 }
 0x1b3   :  { %719 = vst.msk [vmem:[%s1395_s7 + $0x10] sm:$0xff] %vm716_vm1, %v627_v37 }
 0x1b6   :  { %v444_v36 = vpop.f32.mrf.mxu1 }
 0x1b7   :  { %v445_v38 = vadd.f32 %v1133_v12, %v444_v36 }
 0x1b8   :  { %v628_v39 = vpop.f32.mrf.mxu2 }
 0x1b9   :  { %v508_v41 = vmax.f32 %v445_v38, 0.0  ;;  %v629_v42 = vadd.f32 %v1174_v14, %v628_v39 }
 0x1bb   :  { %720 = vst.msk [vmem:[%s1395_s7 + $0x18] sm:$0xff] %vm716_vm1, %v629_v42  ;;  %v535_v43 = vpack.c.bf16 %v508_v41, %v507_v40 }
 0x1bd   :  { %670 = vmatmul.bf16.gmra.mxu2 %v535_v43 }
 0x1be   :  { %v447_v44 = vpop.f32.mrf.mxu1 }
 0x1bf   :  { %v448_v47 = vadd.f32 %v1133_v12, %v447_v44 }
 0x1c0   :  { %v631_v45 = vpop.f32.mrf.mxu2 }
 0x1c1   :  { %v632_v46 = vadd.f32 %v1174_v14, %v631_v45  ;;  %v509_v51 = vmax.f32 %v448_v47, 0.0 }
 0x1c3   :  { %721 = vst.msk [vmem:[%s1395_s7 + $0x20] sm:$0xff] %vm716_vm1, %v632_v46 }
 0x1c6   :  { %v449_v48 = vpop.f32.mrf.mxu1 }
 0x1c7   :  { %v450_v49 = vadd.f32 %v1133_v12, %v449_v48 }
 0x1c8   :  { %v633_v50 = vpop.f32.mrf.mxu2 }
 0x1c9   :  { %v510_v52 = vmax.f32 %v450_v49, 0.0  ;;  %v634_v53 = vadd.f32 %v1174_v14, %v633_v50 }
 0x1cb   :  { %722 = vst.msk [vmem:[%s1395_s7 + $0x28] sm:$0xff] %vm716_vm1, %v634_v53  ;;  %v536_v54 = vpack.c.bf16 %v510_v52, %v509_v51 }
 0x1cd   :  { %675 = vmatmul.bf16.gmra.mxu2 %v536_v54 }
 0x1ce   :  { %v452_v55 = vpop.f32.mrf.mxu1 }
 0x1cf   :  { %v453_v58 = vadd.f32 %v1133_v12, %v452_v55 }
 0x1d0   :  { %v636_v56 = vpop.f32.mrf.mxu2 }
 0x1d1   :  { %v637_v57 = vadd.f32 %v1174_v14, %v636_v56  ;;  %v511_v62 = vmax.f32 %v453_v58, 0.0 }
 0x1d3   :  { %723 = vst.msk [vmem:[%s1395_s7 + $0x30] sm:$0xff] %vm716_vm1, %v637_v57 }
 0x1d6   :  { %v454_v59 = vpop.f32.mrf.mxu1 }
 0x1d7   :  { %v455_v60 = vadd.f32 %v1133_v12, %v454_v59 }
 0x1d8   :  { %v638_v61 = vpop.f32.mrf.mxu2 }
 0x1d9   :  { %v512_v63 = vmax.f32 %v455_v60, 0.0  ;;  %v639_v0 = vadd.f32 %v1174_v14, %v638_v61 }
 0x1db   :  { %v537_v1 = vpack.c.bf16 %v512_v63, %v511_v62  ;;  %724 = vst.msk [vmem:[%s1395_s7 + $0x38] sm:$0xff] %vm716_vm1, %v639_v0 }
 0x1dd   :  { %680 = vmatmul.bf16.gmra.mxu2 %v537_v1 }
 0x1de   :  { %v457_v2 = vpop.f32.mrf.mxu1 }
 0x1df   :  { %v458_v5 = vadd.f32 %v1133_v12, %v457_v2 }
 0x1e0   :  { %v641_v3 = vpop.f32.mrf.mxu2 }
 0x1e1   :  { %v642_v4 = vadd.f32 %v1174_v14, %v641_v3  ;;  %v513_v9 = vmax.f32 %v458_v5, 0.0 }
 0x1e3   :  { %725 = vst.msk [vmem:[%s1395_s7 + $0x40] sm:$0xff] %vm716_vm1, %v642_v4 }
 0x1e6   :  { %v459_v6 = vpop.f32.mrf.mxu1 }
 0x1e7   :  { %v460_v7 = vadd.f32 %v1133_v12, %v459_v6 }
 0x1e8   :  { %v643_v8 = vpop.f32.mrf.mxu2 }
 0x1e9   :  { %v514_v10 = vmax.f32 %v460_v7, 0.0  ;;  %v644_v11 = vadd.f32 %v1174_v14, %v643_v8 }
 0x1eb   :  { %v538_v13 = vpack.c.bf16 %v514_v10, %v513_v9  ;;  %726 = vst.msk [vmem:[%s1395_s7 + $0x48] sm:$0xff] %vm716_vm1, %v644_v11 }
 0x1ed   :  { %685 = vmatmul.bf16.gmra.mxu2 %v538_v13 }
 0x1f0   :  { %v646_v15 = vpop.f32.mrf.mxu2 }
 0x1f1   :  { %v647_v16 = vadd.f32 %v1174_v14, %v646_v15 }
 0x1f3   :  { %727 = vst.msk [vmem:[%s1395_s7 + $0x50] sm:$0xff] %vm716_vm1, %v647_v16 }
 0x1f4   :  { %v462_v17 = vpop.f32.mrf.mxu3 }
 0x1f5   :  { %v463_v20 = vadd.f32 %v1133_v12, %v462_v17 }
 0x1f7   :  { %v515_v23 = vmax.f32 %v463_v20, 0.0 }
 0x1f8   :  { %v648_v18 = vpop.f32.mrf.mxu2 }
 0x1f9   :  { %v649_v19 = vadd.f32 %v1174_v14, %v648_v18 }
 0x1fb   :  { %728 = vst.msk [vmem:[%s1395_s7 + $0x58] sm:$0xff] %vm716_vm1, %v649_v19 }
 0x1fc   :  { %v464_v21 = vpop.f32.mrf.mxu3 }
 0x1fd   :  { %v465_v22 = vadd.f32 %v1133_v12, %v464_v21 }
 0x1ff   :  { %v516_v24 = vmax.f32 %v465_v22, 0.0 }
 0x200   :  { %v651_v25 = vpop.f32.mrf.mxu2 }
 0x201   :  { %v539_v26 = vpack.c.bf16 %v516_v24, %v515_v23  ;;  %v652_v27 = vadd.f32 %v1174_v14, %v651_v25 }
 0x203   :  { %729 = vst.msk [vmem:[%s1395_s7 + $0x60] sm:$0xff] %vm716_vm1, %v652_v27  ;;  %690 = vmatmul.bf16.vlgmr.msra.gmra.mxu3 %v539_v26 }
 0x204   :  { %v467_v28 = vpop.f32.mrf.mxu3 }
 0x205   :  { %v468_v31 = vadd.f32 %v1133_v12, %v467_v28 }
 0x207   :  { %v517_v34 = vmax.f32 %v468_v31, 0.0 }
 0x208   :  { %v653_v29 = vpop.f32.mrf.mxu2 }
 0x209   :  { %v654_v30 = vadd.f32 %v1174_v14, %v653_v29 }
 0x20b   :  { %730 = vst.msk [vmem:[%s1395_s7 + $0x68] sm:$0xff] %vm716_vm1, %v654_v30 }
 0x20c   :  { %v469_v32 = vpop.f32.mrf.mxu3 }
 0x20d   :  { %v470_v33 = vadd.f32 %v1133_v12, %v469_v32 }
 0x20f   :  { %v518_v37 = vmax.f32 %v470_v33, 0.0 }
 0x210   :  { %v656_v35 = vpop.f32.mrf.mxu2 }
 0x211   :  { %v657_v36 = vadd.f32 %v1174_v14, %v656_v35  ;;  %v540_v38 = vpack.c.bf16 %v518_v37, %v517_v34 }
 0x213   :  { %731 = vst.msk [vmem:[%s1395_s7 + $0x70] sm:$0xff] %vm716_vm1, %v657_v36  ;;  %695 = vmatmul.bf16.gmra.mxu3 %v540_v38 }
 0x214   :  { %v472_v39 = vpop.f32.mrf.mxu3 }
 0x215   :  { %v473_v42 = vadd.f32 %v1133_v12, %v472_v39 }
 0x217   :  { %v519_v45 = vmax.f32 %v473_v42, 0.0 }
 0x218   :  { %v658_v40 = vpop.f32.mrf.mxu2 }
 0x219   :  { %v659_v41 = vadd.f32 %v1174_v14, %v658_v40 }
 0x21b   :  { %732 = vst.msk [vmem:[%s1395_s7 + $0x78] sm:$0xff] %vm716_vm1, %v659_v41 }
 0x21c   :  { %v474_v43 = vpop.f32.mrf.mxu3 }
 0x21d   :  { %v475_v44 = vadd.f32 %v1133_v12, %v474_v43 }
 0x21f   :  { %v520_v46 = vmax.f32 %v475_v44, 0.0 }
 0x220   :  { %v661_v47 = vpop.f32.mrf.mxu2 }
 0x221   :  { %v662_v48 = vadd.f32 %v1174_v14, %v661_v47  ;;  %v541_v49 = vpack.c.bf16 %v520_v46, %v519_v45 }
 0x223   :  { %733 = vst.msk [vmem:[%s1395_s7 + $0x80] sm:$0xff] %vm716_vm1, %v662_v48  ;;  %700 = vmatmul.bf16.gmra.mxu3 %v541_v49 }
 0x224   :  { %v477_v50 = vpop.f32.mrf.mxu3 }
 0x225   :  { %v478_v53 = vadd.f32 %v1133_v12, %v477_v50 }
 0x227   :  { %v521_v56 = vmax.f32 %v478_v53, 0.0 }
 0x228   :  { %v663_v51 = vpop.f32.mrf.mxu2 }
 0x229   :  { %v664_v52 = vadd.f32 %v1174_v14, %v663_v51 }
 0x22b   :  { %734 = vst.msk [vmem:[%s1395_s7 + $0x88] sm:$0xff] %vm716_vm1, %v664_v52 }
 0x22c   :  { %v479_v54 = vpop.f32.mrf.mxu3 }
 0x22d   :  { %v480_v55 = vadd.f32 %v1133_v12, %v479_v54 }
 0x22f   :  { %v522_v57 = vmax.f32 %v480_v55, 0.0 }
 0x230   :  { %v666_v58 = vpop.f32.mrf.mxu2 }
 0x231   :  { %v667_v59 = vadd.f32 %v1174_v14, %v666_v58  ;;  %v542_v60 = vpack.c.bf16 %v522_v57, %v521_v56 }
 0x233   :  { %735 = vst.msk [vmem:[%s1395_s7 + $0x90] sm:$0xff] %vm716_vm1, %v667_v59  ;;  %705 = vmatmul.bf16.gmra.mxu3 %v542_v60 }
 0x234   :  { %v482_v61 = vpop.f32.mrf.mxu3 }
 0x235   :  { %v483_v0 = vadd.f32 %v1133_v12, %v482_v61 }
 0x237   :  { %v523_v3 = vmax.f32 %v483_v0, 0.0 }
 0x238   :  { %v668_v62 = vpop.f32.mrf.mxu2 }
 0x239   :  { %v669_v63 = vadd.f32 %v1174_v14, %v668_v62 }
 0x23b   :  { %736 = vst.msk [vmem:[%s1395_s7 + $0x98] sm:$0xff] %vm716_vm1, %v669_v63 }
 0x23c   :  { %v484_v1 = vpop.f32.mrf.mxu3 }
 0x23d   :  { %v485_v2 = vadd.f32 %v1133_v12, %v484_v1 }
 0x23f   :  { %v524_v4 = vmax.f32 %v485_v2, 0.0 }
 0x240   :  { %v671_v5 = vpop.f32.mrf.mxu2 }
 0x241   :  { %v543_v6 = vpack.c.bf16 %v524_v4, %v523_v3  ;;  %v672_v7 = vadd.f32 %v1174_v14, %v671_v5 }
 0x243   :  { %737 = vst.msk [vmem:[%s1395_s7 + $0xa0] sm:$0xff] %vm716_vm1, %v672_v7  ;;  %710 = vmatmul.bf16.gmra.mxu3 %v543_v6 }
 0x248   :  { %v673_v8 = vpop.f32.mrf.mxu2 }
 0x249   :  { %v674_v9 = vadd.f32 %v1174_v14, %v673_v8 }
 0x24b   :  { %738 = vst.msk [vmem:[%s1395_s7 + $0xa8] sm:$0xff] %vm716_vm1, %v674_v9 }
 0x250   :  { %v676_v12 = vpop.f32.mrf.mxu2 }
 0x251   :  { %v677_v10 = vadd.f32 %v1174_v14, %v676_v12 }
 0x253   :  { %739 = vst.msk [vmem:[%s1395_s7 + $0xb0] sm:$0xff] %vm716_vm1, %v677_v10 }
 0x258   :  { %v678_v11 = vpop.f32.mrf.mxu2 }
 0x259   :  { %v679_v13 = vadd.f32 %v1174_v14, %v678_v11 }
 0x25b   :  { %740 = vst.msk [vmem:[%s1395_s7 + $0xb8] sm:$0xff] %vm716_vm1, %v679_v13 }
 0x260   :  { %v681_v15 = vpop.f32.mrf.mxu2 }
 0x261   :  { %v682_v16 = vadd.f32 %v1174_v14, %v681_v15 }
 0x263   :  { %741 = vst.msk [vmem:[%s1395_s7 + $0xc0] sm:$0xff] %vm716_vm1, %v682_v16 }
 0x268   :  { %v683_v17 = vpop.f32.mrf.mxu2 }
 0x269   :  { %v684_v18 = vadd.f32 %v1174_v14, %v683_v17 }
 0x26b   :  { %742 = vst.msk [vmem:[%s1395_s7 + $0xc8] sm:$0xff] %vm716_vm1, %v684_v18 }
 0x270   :  { %v686_v19 = vpop.f32.mrf.mxu2 }
 0x271   :  { %v687_v20 = vadd.f32 %v1174_v14, %v686_v19 }
 0x273   :  { %743 = vst.msk [vmem:[%s1395_s7 + $0xd0] sm:$0xff] %vm716_vm1, %v687_v20 }
 0x278   :  { %v688_v21 = vpop.f32.mrf.mxu2 }
 0x279   :  { %v689_v22 = vadd.f32 %v1174_v14, %v688_v21 }
 0x27b   :  { %744 = vst.msk [vmem:[%s1395_s7 + $0xd8] sm:$0xff] %vm716_vm1, %v689_v22 }
 0x286   :  { %v691_v23 = vpop.f32.mrf.mxu3 }
 0x287   :  { %v692_v24 = vadd.f32 %v1174_v14, %v691_v23 }
 0x289   :  { %745 = vst.msk [vmem:[%s1395_s7 + $0xe0] sm:$0xff] %vm716_vm1, %v692_v24 }
 0x28e   :  { %v693_v25 = vpop.f32.mrf.mxu3 }
 0x28f   :  { %v694_v26 = vadd.f32 %v1174_v14, %v693_v25 }
 0x291   :  { %746 = vst.msk [vmem:[%s1395_s7 + $0xe8] sm:$0xff] %vm716_vm1, %v694_v26 }
 0x296   :  { %v696_v27 = vpop.f32.mrf.mxu3 }
 0x297   :  { %v697_v28 = vadd.f32 %v1174_v14, %v696_v27 }
 0x299   :  { %747 = vst.msk [vmem:[%s1395_s7 + $0xf0] sm:$0xff] %vm716_vm1, %v697_v28 }
 0x29e   :  { %v698_v29 = vpop.f32.mrf.mxu3 }
 0x29f   :  { %v699_v30 = vadd.f32 %v1174_v14, %v698_v29 }
 0x2a1   :  { %748 = vst.msk [vmem:[%s1395_s7 + $0xf8] sm:$0xff] %vm716_vm1, %v699_v30 }
 0x2a6   :  { %v701_v31 = vpop.f32.mrf.mxu3 }
 0x2a7   :  { %v702_v32 = vadd.f32 %v1174_v14, %v701_v31 }
 0x2a9   :  { %749 = vst.msk [vmem:[%s1395_s7 + $0x100] sm:$0xff] %vm716_vm1, %v702_v32 }
 0x2ae   :  { %v703_v33 = vpop.f32.mrf.mxu3 }
 0x2af   :  { %v704_v34 = vadd.f32 %v1174_v14, %v703_v33 }
 0x2b1   :  { %750 = vst.msk [vmem:[%s1395_s7 + $0x108] sm:$0xff] %vm716_vm1, %v704_v34 }
 0x2b6   :  { %v706_v37 = vpop.f32.mrf.mxu3 }
 0x2b7   :  { %v707_v35 = vadd.f32 %v1174_v14, %v706_v37 }
 0x2b9   :  { %751 = vst.msk [vmem:[%s1395_s7 + $0x110] sm:$0xff] %vm716_vm1, %v707_v35 }
 0x2be   :  { %v708_v36 = vpop.f32.mrf.mxu3 }
 0x2bf   :  { %v709_v38 = vadd.f32 %v1174_v14, %v708_v36 }
 0x2c1   :  { %752 = vst.msk [vmem:[%s1395_s7 + $0x118] sm:$0xff] %vm716_vm1, %v709_v38 }
 0x2c6   :  { %v711_v39 = vpop.f32.mrf.mxu3 }
 0x2c7   :  { %v712_v40 = vadd.f32 %v1174_v14, %v711_v39 }
 0x2c9   :  { %753 = vst.msk [vmem:[%s1395_s7 + $0x120] sm:$0xff] %vm716_vm1, %v712_v40 }
 0x2ce   :  { %v713_v41 = vpop.f32.mrf.mxu3 }
 0x2cf   :  { %v714_v42 = vadd.f32 %v1174_v14, %v713_v41 }
 0x2d1   :  { %754 = vst.msk [vmem:[%s1395_s7 + $0x128] sm:$0xff] %vm716_vm1, %v714_v42 }

</bundles_post_ra>
